<compile_context>
chip_gen: v5e
topology: v5e:2x2
jax: 0.10.0
libtpu: 0.0.40
codegen_flags: <defaults>
</compile_context>

<pallas_src>
import jax
import jax.numpy as jnp
from jax.experimental import pallas as pl
from jax.experimental.pallas import tpu as pltpu

# Small synthetic shapes consistent with the module.
B, S, H, V = 2, 8, 32, 512        # batch, seq_len, hidden_size, vocab_size

# Tile / VMEM policy (shared across v5e / v6e / v7x).
_TM_TARGET = 2048                       # row-tile target (weight-reuse lever), multiple of 256
_TN_TARGET = 512                        # vocab-tile target, lane-dense multiple of 128 (and 256)
_VMEM_TILE_BUDGET = 40 * 1024 * 1024    # double-buffered tile working-set budget
_VMEM_LIMIT_BYTES = 48 * 1024 * 1024    # explicit scoped-VMEM limit (safe on v7x's 64 MiB/TC)


def _round_up(x, m):
    return (x + m - 1) // m * m


def _pick_tiles(M, Hh, Vv, in_bytes, out_bytes):
    """Largest (tm, tn) whose double-buffered working set fits the VMEM budget."""
    tn = min(_TN_TARGET, _round_up(Vv, 128))      # lane-dense output tiles (unmasked vst)
    tm = min(_TM_TARGET, _round_up(M, 8))         # as large as possible: cuts weight re-streaming

    def working_set(tm_, tn_):
        # 2x (hidden tile + weight tile) inputs + 2x output tile (double buffering).
        return 2 * (tm_ * Hh + tn_ * Hh) * in_bytes + 2 * tm_ * tn_ * out_bytes

    while tm > 8 and working_set(tm, tn) > _VMEM_TILE_BUDGET:
        tm = _round_up(tm // 2, 8)
    return tm, tn


# ----------------------------------------------------------------------------------------
# Kernel 1: tied-embedding MLM decoder — tiled matmul over a (rows, vocab) grid.
# The weight stays in torch layout [V, H]; contract H of both operands (y = x @ W.T),
# accumulate in f32 on the MXU.  No reduction grid axis (K = H is whole in VMEM).
# ----------------------------------------------------------------------------------------
def mlm_decoder_kernel(hid_ref, wvh_ref, mlm_ref):
    # hid_ref: (tm, H) compute dtype; wvh_ref: (tn, H); mlm_ref: (tm, tn) out dtype
    mlm_ref[...] = jax.lax.dot_general(
        hid_ref[...], wvh_ref[...],
        dimension_numbers=(((1,), (1,)), ((), ())),
        preferred_element_type=jnp.float32,
    ).astype(mlm_ref.dtype)


# ----------------------------------------------------------------------------------------
# Kernel 2: NSP head on the [CLS] token — tiny gridless call (B x H inputs only).
# ----------------------------------------------------------------------------------------
def nsp_kernel(cls_ref, wnsp_ref, bnsp_ref, nsp_ref):
    # cls_ref: (B, H), wnsp_ref: (2, H) torch layout, bnsp_ref: (1, 2), nsp_ref: (B, 2)
    nsp_ref[...] = (
        jax.lax.dot_general(cls_ref[...], wnsp_ref[...],
                            dimension_numbers=(((1,), (1,)), ((), ())),
                            preferred_element_type=jnp.float32)
        + bnsp_ref[...]
    ).astype(nsp_ref.dtype)


# ----------------------------------------------------------------------------------------
# Wrapper: flatten tokens, derive tiles from VMEM, tile the decoder matmul, run the NSP head.
# ----------------------------------------------------------------------------------------
def mask_lm_header_forward(hidden_states, embedding_weights, nsp_weight, nsp_bias,
                           *, compute_dtype=jnp.bfloat16, out_dtype=None):
    Bb, Ss, Hh = hidden_states.shape
    Vv = embedding_weights.shape[0]
    M = Bb * Ss
    out_dtype = hidden_states.dtype if out_dtype is None else out_dtype

    in_bytes = jnp.dtype(compute_dtype).itemsize
    out_bytes = jnp.dtype(out_dtype).itemsize
    tm, tn = _pick_tiles(M, Hh, Vv, in_bytes, out_bytes)
    Mp, Vp = _round_up(M, tm), _round_up(Vv, tn)

    # bf16 streaming copies.  (Production: store the tied weight pre-cast / pre-padded once
    # outside jit so neither the cast nor the pad is paid per forward.)
    hid2d = hidden_states.reshape(M, Hh).astype(compute_dtype)
    wvh = embedding_weights.astype(compute_dtype)            # torch layout [V, H]; no transpose
    if Mp != M:
        hid2d = jnp.pad(hid2d, ((0, Mp - M), (0, 0)))
    if Vp != Vv:
        wvh = jnp.pad(wvh, ((0, Vp - Vv), (0, 0)))

    # Rows outer, vocab inner: the (tm, H) hidden tile is resident across the inner vocab sweep,
    # so the big [V, H] weight is re-streamed only Mp/tm times (tm maximized above).
    grid = (Mp // tm, Vp // tn)
    cost = pl.CostEstimate(
        flops=2 * Mp * Vp * Hh,
        transcendentals=0,
        bytes_accessed=(Mp * Hh * in_bytes                 # hidden, streamed once
                        + grid[0] * Vp * Hh * in_bytes     # weight, re-streamed per row tile
                        + Mp * Vp * out_bytes),            # logits writeback
    )

    mlm2d = pl.pallas_call(
        mlm_decoder_kernel,
        out_shape=jax.ShapeDtypeStruct((Mp, Vp), out_dtype),
        grid_spec=pltpu.PrefetchScalarGridSpec(
            num_scalar_prefetch=0,
            grid=grid,
            in_specs=[
                pl.BlockSpec((tm, Hh), lambda i, j: (i, 0)),   # row tile, full K; constant over j
                pl.BlockSpec((tn, Hh), lambda i, j: (j, 0)),   # vocab tile of the [V, H] weight
                # If xprof shows exposed weight DMA at large tiles, add
                # pipeline_mode=pl.Buffered(3) on the weight spec for deeper prefetch.
            ],
            out_specs=pl.BlockSpec((tm, tn), lambda i, j: (i, j)),
        ),
        compiler_params=pltpu.CompilerParams(
            dimension_semantics=("parallel", "parallel"),      # independent axes; megacore-shardable
            vmem_limit_bytes=_VMEM_LIMIT_BYTES,
        ),
        cost_estimate=cost,
    )(hid2d, wvh)
    mlm_out = mlm2d[:M, :Vv].reshape(Bb, Ss, Vv)

    # NSP head on hidden_states[:, 0, :] only ([CLS] rows).
    cls_hidden = hidden_states[:, 0, :]                        # [B, H]
    nsp_out = pl.pallas_call(
        nsp_kernel,
        out_shape=jax.ShapeDtypeStruct((Bb, 2), hidden_states.dtype),
        in_specs=[pl.BlockSpec(memory_space=pltpu.MemorySpace.VMEM)] * 3,
        out_specs=pl.BlockSpec(memory_space=pltpu.MemorySpace.VMEM),
    )(cls_hidden, nsp_weight, nsp_bias.reshape(1, 2))

    return mlm_out, nsp_out


# ----------------------------------------------------------------------------------------
# Plain-JAX reference (mirrors the PyTorch forward) for validation.
# ----------------------------------------------------------------------------------------
def ref_forward(hidden_states, embedding_weights, nsp_weight, nsp_bias):
    mlm_out = jnp.einsum("bsh,vh->bsv", hidden_states, embedding_weights,
                         precision=jax.lax.Precision.HIGHEST)
    nsp_out = jnp.einsum("bh,ch->bc", hidden_states[:, 0, :], nsp_weight,
                         precision=jax.lax.Precision.HIGHEST) + nsp_bias
    return mlm_out, nsp_out


if __name__ == "__main__":
    key = jax.random.PRNGKey(0)
    k_h, k_e, k_w, k_b = jax.random.split(key, 4)

    hidden_states = jax.random.normal(k_h, (B, S, H), jnp.float32)
    embedding_weights = 0.02 * jax.random.normal(k_e, (V, H), jnp.float32)   # torch layout [V, H]
    nsp_weight = 0.02 * jax.random.normal(k_w, (2, H), jnp.float32)          # torch layout [2, H]
    nsp_bias = 0.02 * jax.random.normal(k_b, (2,), jnp.float32)

    run = jax.jit(mask_lm_header_forward)
    mlm_out, nsp_out = jax.block_until_ready(
        run(hidden_states, embedding_weights, nsp_weight, nsp_bias))

    mlm_ref, nsp_ref = ref_forward(hidden_states, embedding_weights, nsp_weight, nsp_bias)
    assert mlm_out.shape == (B, S, V) and nsp_out.shape == (B, 2)
    # MLM logits are computed from bf16-streamed operands with f32 MXU accumulation.
    assert jnp.allclose(mlm_out, mlm_ref, atol=2e-2, rtol=2e-2)
    # NSP head runs fully in f32.
    assert jnp.allclose(nsp_out, nsp_ref, atol=1e-4, rtol=1e-4)

    print("KERNEL_OK")
</pallas_src>

<mosaic_0001>
module attributes {stable_mosaic.version = 11 : i64} {
  func.func @nsp_kernel(%arg0: memref<2x32xf32, #tpu.memory_space<vmem>>, %arg1: memref<2x32xf32, #tpu.memory_space<vmem>>, %arg2: memref<1x2xf32, #tpu.memory_space<vmem>>, %arg3: memref<2x2xf32, #tpu.memory_space<vmem>>) attributes {dimension_semantics = [], scalar_prefetch = 0 : i64, scratch_operands = 0 : i64, tpu.core_type = #tpu.core_type<tc>} {
    %c0 = arith.constant 0 : index
    %c0_0 = arith.constant 0 : index
    %0 = vector.load %arg0[%c0, %c0_0] : memref<2x32xf32, #tpu.memory_space<vmem>>, vector<2x32xf32>
    %c0_1 = arith.constant 0 : index
    %c0_2 = arith.constant 0 : index
    %1 = vector.load %arg1[%c0_1, %c0_2] : memref<2x32xf32, #tpu.memory_space<vmem>>, vector<2x32xf32>
    %cst = arith.constant dense<0.000000e+00> : vector<2x2xf32>
    %2 = tpu.matmul %0, %1, %cst {dimension_numbers = #tpu.dot_dimension_numbers<[1], [1], [0], [0], [0, 0, 1, 0], [], []>} : vector<2x32xf32>, vector<2x32xf32>, vector<2x2xf32> -> vector<2x2xf32>
    %c0_3 = arith.constant 0 : index
    %c0_4 = arith.constant 0 : index
    %3 = vector.load %arg2[%c0_3, %c0_4] : memref<1x2xf32, #tpu.memory_space<vmem>>, vector<1x2xf32>
    %4 = vector.broadcast %3 : vector<1x2xf32> to vector<2x2xf32>
    %5 = arith.addf %2, %4 : vector<2x2xf32>
    %c0_5 = arith.constant 0 : index
    %c0_6 = arith.constant 0 : index
    %6 = vector.load %arg3[%c0_5, %c0_6] : memref<2x2xf32, #tpu.memory_space<vmem>>, vector<2x2xf32>
    tpu.vector_store %arg3[%c0_5, %c0_6], %5 {strides = array<i32>} : memref<2x2xf32, #tpu.memory_space<vmem>>, vector<2x2xf32>,
    return
  }
}

module attributes {stable_mosaic.version = 11 : i64} {
  func.func @mlm_decoder_kernel(%arg0: i32, %arg1: i32, %arg2: memref<16x32xbf16, #tpu.memory_space<vmem>>, %arg3: memref<512x32xbf16, #tpu.memory_space<vmem>>, %arg4: memref<16x512xf32, #tpu.memory_space<vmem>>) attributes {dimension_semantics = [#tpu.dimension_semantics<parallel>, #tpu.dimension_semantics<parallel>], iteration_bounds = array<i64: 1, 1>, scalar_prefetch = 0 : i64, scratch_operands = 0 : i64, tpu.core_type = #tpu.core_type<tc>, window_params = [{transform_indices = @transform_0, window_bounds = array<i64: 16, 32>}, {transform_indices = @transform_1, window_bounds = array<i64: 512, 32>}, {transform_indices = @transform_2, window_bounds = array<i64: 16, 512>}]} {
    %c0 = arith.constant 0 : index
    %c0_0 = arith.constant 0 : index
    %0 = vector.load %arg2[%c0, %c0_0] : memref<16x32xbf16, #tpu.memory_space<vmem>>, vector<16x32xbf16>
    %c0_1 = arith.constant 0 : index
    %c0_2 = arith.constant 0 : index
    %1 = vector.load %arg3[%c0_1, %c0_2] : memref<512x32xbf16, #tpu.memory_space<vmem>>, vector<512x32xbf16>
    %cst = arith.constant dense<0.000000e+00> : vector<16x512xf32>
    %2 = tpu.matmul %0, %1, %cst {dimension_numbers = #tpu.dot_dimension_numbers<[1], [1], [0], [0], [0, 0, 1, 0], [], []>} : vector<16x32xbf16>, vector<512x32xbf16>, vector<16x512xf32> -> vector<16x512xf32>
    %c0_3 = arith.constant 0 : index
    %c0_4 = arith.constant 0 : index
    %3 = vector.load %arg4[%c0_3, %c0_4] : memref<16x512xf32, #tpu.memory_space<vmem>>, vector<16x512xf32>
    tpu.vector_store %arg4[%c0_3, %c0_4], %2 {strides = array<i32>} : memref<16x512xf32, #tpu.memory_space<vmem>>, vector<16x512xf32>,
    return
  }
  func.func @transform_0(%arg0: i32, %arg1: i32) -> (i32, i32) {
    %c0_i32 = arith.constant 0 : i32
    %c0_i32_0 = arith.constant 0 : i32
    return %arg0, %c0_i32 : i32, i32
  }
  func.func @transform_1(%arg0: i32, %arg1: i32) -> (i32, i32) {
    %c0_i32 = arith.constant 0 : i32
    %c0_i32_0 = arith.constant 0 : i32
    return %arg1, %c0_i32 : i32, i32
  }
  func.func @transform_2(%arg0: i32, %arg1: i32) -> (i32, i32) {
    %c0_i32 = arith.constant 0 : i32
    return %arg0, %arg1 : i32, i32
  }
}

</mosaic_0001>

<bundles_post_ra>
// kernel: mask_lm_header_forward.3
= control target key start
LH: loop header
LB: loop body
LE: loop exit
PB: predicated region body
PF: predicated region fallthrough
CT: control target
= control target key end

     0   :  { %vm21_vm0 = vcmask 261120   ;;  %s129_s0 = inlined_call_operand.vmem [shape: f32[2,32], index: 0, kind: input, shape index: {}]   ;;  %s130_s1 = inlined_call_operand.vmem [shape: f32[2,32], index: 1, kind: input, shape index: {}]   ;;  %s131_s2 = inlined_call_operand.vmem [shape: f32[1,2], index: 2, kind: input, shape index: {}]   ;;  %s132_s3 = inlined_call_operand.hbm [shape: f32[2,2], index: 3, kind: output, shape index: {}]  }
   0x1   :  { %v16_v0 = vld [vmem:[%s130_s1] sm:$0x3] }
   0x2   :  { %66 = vmatpush.xpose.msk.msra.mxu0 %vm21_vm0, %v16_v0  ;;  %v15_v1 = vld [vmem:[%s129_s0] sm:$0x3] }
   0x3   :  { %8 = vsyncpa [#allocation3], 0  ;;  %v69_v2 = vld [vmem:[%s131_s2] ss:$0 sm:$0xff]  ;;  %s96_s18 = smov [#allocation2]   ;;  %s57_s22 = sshll.u32 %s132_s3, 4  ;;  %s58_s22 = int_to_ptr.hbm [resolvable:$true] %s57_s22 }
   0x4   :  { %s55_s19 = sshll.u32 %s96_s18, 4  ;;  %vm48_vm1 = vcmask 9216   ;;  %s56_s19 = int_to_ptr.vmem [resolvable:$true] %s55_s19 }
   0x5   :  { %67 = vmatmul.msk.f32.vlgmr.msra.gmra.mxu0 %vm21_vm0, %v15_v1 }
  0x82   :  { %v45_v3 = vpop.f32.mrf.mxu0 }
  0x83   :  { %v46_v4 = vadd.f32 %v69_v2, %v45_v3 }
  0x85   :  { %49 = vst.msk [vmem:[#allocation2] sm:$0x3] %vm48_vm1, %v46_v4 }
  0x86   :  { %60 = dma.vmem_to_hbm [thread:$0]  %s56_s19, 32, %s58_s22, [#allocation3]  }
  0x87   :  { %94 = dma.done.wait [#allocation3], 32  }
  0x88   :  { %95 = vsyncadd [#allocation3], 4294967264 }
  0x89   :  { %65 = vsyncpa [#allocation3], 1 }

// kernel: mask_lm_header_forward.2
= control target key start
LH: loop header
LB: loop body
LE: loop exit
PB: predicated region body
PF: predicated region fallthrough
CT: control target
= control target key end

     0   :  { %vm243_vm0 = vcmask 261120   ;;  %s779_s0 = inlined_call_operand.vmem [shape: bf16[16,32], index: 0, kind: input, shape index: {}]   ;;  %s780_s1 = inlined_call_operand.vmem [shape: bf16[512,32], index: 1, kind: input, shape index: {}]   ;;  %s781_s2 = inlined_call_operand.hbm [shape: f32[16,512], index: 2, kind: output, shape index: {}]  }
   0x1   :  { %v569_v0 = vld [vmem:[%s780_s1 + $0x38] sm:$0xff]  ;;  %v568_v8 = vld [vmem:[%s780_s1 + $0x30] sm:$0xff] }
   0x2   :  { %v577_v1 = vld [vmem:[%s780_s1 + $0x78] sm:$0xff]  ;;  %v269_v4 = vsel %vm243_vm0, %v569_v0, 0  ;;  %v576_v9 = vld [vmem:[%s780_s1 + $0x70] sm:$0xff] }
   0x3   :  { %v585_v2 = vld [vmem:[%s780_s1 + $0xb8] sm:$0xff]  ;;  %v293_v5 = vsel %vm243_vm0, %v577_v1, 0  ;;  %343 = vmatpush.bf16.xpose.msra.mxu0 %v269_v4  ;;  %v584_v10 = vld [vmem:[%s780_s1 + $0xb0] sm:$0xff] }
   0x4   :  { %v593_v3 = vld [vmem:[%s780_s1 + $0xf8] sm:$0xff]  ;;  %v317_v6 = vsel %vm243_vm0, %v585_v2, 0  ;;  %357 = vmatpush.bf16.xpose.msra.mxu1 %v293_v5  ;;  %v592_v11 = vld [vmem:[%s780_s1 + $0xf0] sm:$0xff] }
   0x5   :  { %v341_v7 = vsel %vm243_vm0, %v593_v3, 0  ;;  %371 = vmatpush.bf16.xpose.msra.mxu2 %v317_v6 }
   0x6   :  { %385 = vmatpush.bf16.xpose.msra.mxu3 %v341_v7 }
   0x7   :  { %7 = vsyncpa [#allocation3], 0  ;;  %v266_v12 = vsel %vm243_vm0, %v568_v8, 0  ;;  %v290_v13 = vsel %vm243_vm0, %v576_v9, 0  ;;  %v314_v14 = vsel %vm243_vm0, %v584_v10, 0  ;;  %v338_v15 = vsel %vm243_vm0, %v592_v11, 0 }
   0x8   :  { %v567_v16 = vld [vmem:[%s780_s1 + $0x28] sm:$0xff]  ;;  %v566_v24 = vld [vmem:[%s780_s1 + $0x20] sm:$0xff]  ;;  %v565_v32 = vld [vmem:[%s780_s1 + $0x18] sm:$0xff]  ;;  %s413_s21 = sshll.u32 %s781_s2, 4  ;;  %s624_s22 = smov 512   ;;  %s414_s21 = int_to_ptr.hbm [resolvable:$true] %s413_s21 }
   0x9   :  { %v575_v17 = vld [vmem:[%s780_s1 + $0x68] sm:$0xff]  ;;  %v263_v20 = vsel %vm243_vm0, %v567_v16, 0  ;;  %v574_v25 = vld [vmem:[%s780_s1 + $0x60] sm:$0xff]  ;;  %v260_v28 = vsel %vm243_vm0, %v566_v24, 0  ;;  %v573_v33 = vld [vmem:[%s780_s1 + $0x58] sm:$0xff]  ;;  %v257_v36 = vsel %vm243_vm0, %v565_v32, 0 }
   0xa   :  { %v583_v18 = vld [vmem:[%s780_s1 + $0xa8] sm:$0xff]  ;;  %v287_v21 = vsel %vm243_vm0, %v575_v17, 0  ;;  %v582_v26 = vld [vmem:[%s780_s1 + $0xa0] sm:$0xff]  ;;  %v284_v29 = vsel %vm243_vm0, %v574_v25, 0  ;;  %v581_v34 = vld [vmem:[%s780_s1 + $0x98] sm:$0xff]  ;;  %v281_v37 = vsel %vm243_vm0, %v573_v33, 0 }
   0xb   :  { %344 = vmatpush.bf16.xpose.msra.mxu0 %v266_v12  ;;  %v591_v19 = vld [vmem:[%s780_s1 + $0xe8] sm:$0xff]  ;;  %v311_v22 = vsel %vm243_vm0, %v583_v18, 0  ;;  %v590_v27 = vld [vmem:[%s780_s1 + $0xe0] sm:$0xff]  ;;  %v308_v30 = vsel %vm243_vm0, %v582_v26, 0  ;;  %v589_v35 = vld [vmem:[%s780_s1 + $0xd8] sm:$0xff]  ;;  %v305_v38 = vsel %vm243_vm0, %v581_v34, 0 }
   0xc   :  { %358 = vmatpush.bf16.xpose.msra.mxu1 %v290_v13  ;;  %v335_v23 = vsel %vm243_vm0, %v591_v19, 0  ;;  %v332_v31 = vsel %vm243_vm0, %v590_v27, 0  ;;  %v329_v39 = vsel %vm243_vm0, %v589_v35, 0  ;;  %v564_v40 = vld [vmem:[%s780_s1 + $0x10] sm:$0xff]  ;;  %v563_v48 = vld [vmem:[%s780_s1 + $0x8] sm:$0xff]  ;;  %v562_v56 = vld [vmem:[%s780_s1] sm:$0xff] }
   0xd   :  { %372 = vmatpush.bf16.xpose.msra.mxu2 %v314_v14  ;;  %v572_v41 = vld [vmem:[%s780_s1 + $0x50] sm:$0xff]  ;;  %v254_v44 = vsel %vm243_vm0, %v564_v40, 0  ;;  %v571_v49 = vld [vmem:[%s780_s1 + $0x48] sm:$0xff]  ;;  %v251_v52 = vsel %vm243_vm0, %v563_v48, 0  ;;  %v570_v57 = vld [vmem:[%s780_s1 + $0x40] sm:$0xff]  ;;  %v248_v60 = vsel %vm243_vm0, %v562_v56, 0 }
   0xe   :  { %386 = vmatpush.bf16.xpose.msra.mxu3 %v338_v15  ;;  %v580_v42 = vld [vmem:[%s780_s1 + $0x90] sm:$0xff]  ;;  %v278_v45 = vsel %vm243_vm0, %v572_v41, 0  ;;  %v579_v50 = vld [vmem:[%s780_s1 + $0x88] sm:$0xff]  ;;  %v275_v53 = vsel %vm243_vm0, %v571_v49, 0  ;;  %v578_v58 = vld [vmem:[%s780_s1 + $0x80] sm:$0xff]  ;;  %v272_v61 = vsel %vm243_vm0, %v570_v57, 0 }
   0xf   :  { %v588_v43 = vld [vmem:[%s780_s1 + $0xd0] sm:$0xff]  ;;  %v302_v46 = vsel %vm243_vm0, %v580_v42, 0  ;;  %v587_v51 = vld [vmem:[%s780_s1 + $0xc8] sm:$0xff]  ;;  %v299_v54 = vsel %vm243_vm0, %v579_v50, 0  ;;  %v586_v59 = vld [vmem:[%s780_s1 + $0xc0] sm:$0xff]  ;;  %v296_v62 = vsel %vm243_vm0, %v578_v58, 0 }
  0x10   :  { %v326_v47 = vsel %vm243_vm0, %v588_v43, 0  ;;  %v323_v55 = vsel %vm243_vm0, %v587_v51, 0  ;;  %v320_v63 = vsel %vm243_vm0, %v586_v59, 0  ;;  %v561_v0 = vld [vmem:[%s779_s0] sm:$0xff]  ;;  %s623_s0 = smov [#allocation2]   ;;  %s625_s23 = smov 32  }
  0x11   :  { %s411_s1 = sshll.u32 %s623_s0, 4  ;;  %s412_s1 = int_to_ptr.vmem [resolvable:$true] %s411_s1 }
  0x13   :  { %345 = vmatpush.bf16.xpose.msra.mxu0 %v263_v20 }
  0x14   :  { %359 = vmatpush.bf16.xpose.msra.mxu1 %v287_v21 }
  0x15   :  { %373 = vmatpush.bf16.xpose.msra.mxu2 %v311_v22 }
  0x16   :  { %387 = vmatpush.bf16.xpose.msra.mxu3 %v335_v23 }
  0x1b   :  { %346 = vmatpush.bf16.xpose.msra.mxu0 %v260_v28 }
  0x1c   :  { %360 = vmatpush.bf16.xpose.msra.mxu1 %v284_v29 }
  0x1d   :  { %374 = vmatpush.bf16.xpose.msra.mxu2 %v308_v30 }
  0x1e   :  { %388 = vmatpush.bf16.xpose.msra.mxu3 %v332_v31 }
  0x23   :  { %347 = vmatpush.bf16.xpose.msra.mxu0 %v257_v36 }
  0x24   :  { %361 = vmatpush.bf16.xpose.msra.mxu1 %v281_v37 }
  0x25   :  { %375 = vmatpush.bf16.xpose.msra.mxu2 %v305_v38 }
  0x26   :  { %389 = vmatpush.bf16.xpose.msra.mxu3 %v329_v39 }
  0x2b   :  { %348 = vmatpush.bf16.xpose.msra.mxu0 %v254_v44 }
  0x2c   :  { %362 = vmatpush.bf16.xpose.msra.mxu1 %v278_v45 }
  0x2d   :  { %376 = vmatpush.bf16.xpose.msra.mxu2 %v302_v46 }
  0x2e   :  { %390 = vmatpush.bf16.xpose.msra.mxu3 %v326_v47 }
  0x33   :  { %349 = vmatpush.bf16.xpose.msra.mxu0 %v251_v52 }
  0x34   :  { %363 = vmatpush.bf16.xpose.msra.mxu1 %v275_v53 }
  0x35   :  { %377 = vmatpush.bf16.xpose.msra.mxu2 %v299_v54 }
  0x36   :  { %391 = vmatpush.bf16.xpose.msra.mxu3 %v323_v55 }
  0x3b   :  { %350 = vmatpush.bf16.xpose.msra.mxu0 %v248_v60 }
  0x3c   :  { %364 = vmatpush.bf16.xpose.msra.mxu1 %v272_v61 }
  0x3d   :  { %378 = vmatpush.bf16.xpose.msra.mxu2 %v296_v62 }
  0x3e   :  { %392 = vmatpush.bf16.xpose.msra.mxu3 %v320_v63 }
  0x42   :  { %557 = vmatmul.msk.bf16.vlgmr.msra.gmra.mxu0 %vm243_vm0, %v561_v0 }
  0x43   :  { %558 = vmatmul.msk.bf16.vlgmr.msra.gmra.mxu1 %vm243_vm0, %v561_v0 }
  0x44   :  { %559 = vmatmul.msk.bf16.vlgmr.msra.gmra.mxu2 %vm243_vm0, %v561_v0 }
  0x45   :  { %560 = vmatmul.msk.bf16.vlgmr.msra.gmra.mxu3 %vm243_vm0, %v561_v0 }
  0xbf   :  { %v352_v1 = vpop.f32.mrf.mxu0 }
  0xc0   :  { %v366_v2 = vpop.f32.mrf.mxu1  ;;  %399 = vst [vmem:[#allocation2] sm:$0xff] %v352_v1 }
  0xc1   :  { %400 = vst [vmem:[#allocation2 + $0x8] sm:$0xff] %v366_v2 }
  0xc7   :  { %v380_v3 = vpop.f32.mrf.mxu2  ;;  %v354_v5 = vpop.f32.mrf.mxu0 }
  0xc8   :  { %v394_v4 = vpop.f32.mrf.mxu3  ;;  %401 = vst [vmem:[#allocation2 + $0x10] sm:$0xff] %v380_v3  ;;  %v368_v6 = vpop.f32.mrf.mxu1 }
  0xc9   :  { %402 = vst [vmem:[#allocation2 + $0x18] sm:$0xff] %v394_v4 }
  0xca   :  { %403 = vst [vmem:[#allocation2 + $0x20] sm:$0xff] %v354_v5 }
  0xcb   :  { %404 = vst [vmem:[#allocation2 + $0x28] sm:$0xff] %v368_v6 }
  0xcf   :  { %v382_v7 = vpop.f32.mrf.mxu2 }
  0xd0   :  { %v396_v8 = vpop.f32.mrf.mxu3  ;;  %405 = vst [vmem:[#allocation2 + $0x30] sm:$0xff] %v382_v7 }
  0xd1   :  { %406 = vst [vmem:[#allocation2 + $0x38] sm:$0xff] %v396_v8 }
  0xd2   :  { %419 = dma.vmem_to_hbm [thread:$0]  %s412_s1, 1024, %s414_s21, [#allocation3], %s624_s22, %s624_s22, %s625_s23  }
  0xd3   :  { %621 = dma.done.wait [#allocation3], 1024  }
  0xd4   :  { %622 = vsyncadd [#allocation3], 4294966272 }
  0xd5   :  { %424 = vsyncpa [#allocation3], 1 }

</bundles_post_ra>
